<compile_context>
chip_gen: v5e
topology: v5e:2x2
jax: 0.10.0
libtpu: 0.0.40
codegen_flags: <defaults>
</compile_context>

<pallas_src>
import warnings

import jax
import jax.numpy as jnp
from jax import lax
from jax.experimental import pallas as pl
from jax.experimental.pallas import tpu as pltpu


def _cdiv(a, b):
    return -(-a // b)


def _vmem_capacity_bytes():
    try:
        return int(pltpu.get_tpu_info().vmem_capacity_bytes)
    except Exception:  # pragma: no cover - defensive fallback off-TPU hosts
        return 64 << 20  # conservative: v7x per-TensorCore VMEM


def _generic_kernel(n_cls, block_cls, num_blocks, n_ctx, ctx_dim, out_dtype):
    """Generic (shared) context: one (1, n_ctx, D) block broadcast to all classes."""
    last = num_blocks - 1

    def kernel(ctx_ref, emb_ref, out_ref, stage, sem):
        del emb_ref  # aliased to out_ref; never read (prefix/suffix untouched)
        i = pl.program_id(0)
        slot = lax.rem(i, 2)

        # Materialize the broadcast/cast context once; `stage` is persistent
        # scratch, so every later step only issues DMAs.
        @pl.when(i == 0)
        def _():
            stage[...] = jnp.broadcast_to(
                ctx_ref[...].astype(out_dtype), (block_cls, n_ctx, ctx_dim))

        def _wait(s):
            # Shape-matched descriptor; only the transfer size matters for wait.
            pltpu.make_async_copy(
                stage,
                out_ref.at[pl.ds(0, block_cls), pl.ds(1, n_ctx), :],
                sem.at[s]).wait()

        # Double-buffered outbound store: wait for the DMA issued two steps ago
        # on this semaphore slot before reusing it.
        @pl.when(i >= 2)
        def _():
            _wait(slot)

        # Clamp the class offset for the last (possibly partial) block; the
        # overlapped rows are re-written with identical bytes, so non-divisor
        # n_cls is handled without shrinking the copy.
        start = jnp.minimum(i * block_cls, n_cls - block_cls)
        pltpu.make_async_copy(
            stage,
            out_ref.at[pl.ds(start, block_cls), pl.ds(1, n_ctx), :],
            sem.at[slot]).start()

        # Epilogue: drain every still-outstanding store.
        @pl.when(i == last)
        def _():
            _wait(slot)
            if num_blocks >= 2:
                _wait(1 - slot)

    return kernel


def _csc_cast_kernel(n_cls, block_cls, num_blocks, n_ctx, ctx_dim, out_dtype):
    """Class-specific context that needs a dtype cast: 2-slot staged store."""
    last = num_blocks - 1

    def kernel(ctx_ref, emb_ref, out_ref, stage, sem):
        del emb_ref
        i = pl.program_id(0)
        slot = lax.rem(i, 2)

        def _wait(s):
            pltpu.make_async_copy(
                stage.at[s],
                out_ref.at[pl.ds(0, block_cls), pl.ds(1, n_ctx), :],
                sem.at[s]).wait()

        # Before refilling stage[slot], wait for the store issued from it two
        # steps ago (double-buffered outbound DMA).
        @pl.when(i >= 2)
        def _():
            _wait(slot)

        stage[slot] = ctx_ref[...].astype(out_dtype)

        start = jnp.minimum(i * block_cls, n_cls - block_cls)
        pltpu.make_async_copy(
            stage.at[slot],
            out_ref.at[pl.ds(start, block_cls), pl.ds(1, n_ctx), :],
            sem.at[slot]).start()

        @pl.when(i == last)
        def _():
            _wait(slot)
            if num_blocks >= 2:
                _wait(1 - slot)

    return kernel


def _csc_direct_kernel(n_cls, block_cls, n_ctx):
    """Class-specific context, same dtype: DMA straight from the pipelined
    ctx input block (no staging VMEM round trip).  The in-step wait guarantees
    the store finishes before the pipeline reuses this input buffer; the store
    still overlaps the pipeline's prefetch of the next ctx block."""

    def kernel(ctx_ref, emb_ref, out_ref, sem):
        del emb_ref
        i = pl.program_id(0)
        start = jnp.minimum(i * block_cls, n_cls - block_cls)
        cp = pltpu.make_async_copy(
            ctx_ref,
            out_ref.at[pl.ds(start, block_cls), pl.ds(1, n_ctx), :],
            sem)
        cp.start()
        cp.wait()

    return kernel


def prompt_learner_forward(ctx, prompt_embedding, *, min_steps=2):
    """Pallas PromptLearner.forward (class_token_position='end').

    Args:
      ctx: (n_ctx, D) generic context, or (n_cls, n_ctx, D) class-specific
        context (CSC).
      prompt_embedding: (n_cls, seq_len, D) frozen CLIP token embedding of the
        tokenized prompts (token_prefix == [:, :1, :],
        token_suffix == [:, 1 + n_ctx:, :]).
      min_steps: minimum grid steps when n_cls allows (2 lets the megacore
        "parallel" CSC fast path split classes across TensorCores; it costs at
        most one extra ~0.35us step on single-core chips).

    Returns:
      prompts: (n_cls, seq_len, D), dtype of prompt_embedding.
    """
    n_cls, seq_len, ctx_dim = prompt_embedding.shape
    out_dtype = prompt_embedding.dtype
    csc = ctx.ndim == 3
    n_ctx = ctx.shape[1] if csc else ctx.shape[0]
    if csc:
        assert ctx.shape[0] == n_cls, "class-specific ctx must have n_cls rows"
    assert 1 + n_ctx <= seq_len, "n_ctx too large for sequence length"
    needs_cast = jnp.dtype(ctx.dtype) != jnp.dtype(out_dtype)

    ctx_item = jnp.dtype(ctx.dtype).itemsize
    out_item = jnp.dtype(out_dtype).itemsize
    row_elems = n_ctx * ctx_dim  # elements per class

    # Per-class VMEM bytes of this variant's buffers (Pallas double-buffers the
    # pipelined ctx input; the outbound stage is 1 or 2 deep).
    if not csc:
        per_class_vmem = row_elems * out_item                      # shared stage
    elif needs_cast:
        per_class_vmem = row_elems * (2 * ctx_item + 2 * out_item)  # input + stage
    else:
        per_class_vmem = row_elems * 2 * ctx_item                  # input only

    # Block sizing from the actual VMEM budget (v7x: 64 MiB -> ~16 MiB buffers;
    # v5e/v6e: 128 MiB -> ~32 MiB), instead of a magic 1-MiB target.
    vmem_cap = _vmem_capacity_bytes()
    vmem_budget = min(vmem_cap // 4, 32 << 20)
    max_block_cls = max(1, vmem_budget // per_class_vmem)

    steps = _cdiv(n_cls, max_block_cls)
    if n_cls >= min_steps:
        steps = max(steps, min_steps)
    steps = min(steps, n_cls)
    block_cls = _cdiv(n_cls, steps)
    num_blocks = _cdiv(n_cls, block_cls)
    grid = (num_blocks,)

    if csc:
        # Re-block so every grid step sees a full (block_cls, n_ctx, D) tile:
        # the last tile holds the final block_cls classes and the kernel clamps
        # its destination offset to match.  No-op when block_cls divides n_cls.
        if num_blocks * block_cls != n_cls:
            ctx3 = jnp.concatenate(
                [ctx[: (num_blocks - 1) * block_cls], ctx[n_cls - block_cls:]],
                axis=0)
        else:
            ctx3 = ctx
        ctx_spec = pl.BlockSpec((block_cls, n_ctx, ctx_dim),
                                lambda i: (i, 0, 0))
    else:
        # Single small block, constant index map -> fetched to VMEM only once.
        ctx3 = ctx[None]
        ctx_spec = pl.BlockSpec((1, n_ctx, ctx_dim), lambda i: (0, 0, 0))

    if not csc:
        kernel = _generic_kernel(n_cls, block_cls, num_blocks, n_ctx, ctx_dim,
                                 out_dtype)
        scratch = [pltpu.VMEM((block_cls, n_ctx, ctx_dim), out_dtype),
                   pltpu.SemaphoreType.DMA((2,))]
        # Fill-once stage + cross-step semaphore parity need in-order steps.
        semantics = ("arbitrary",)
        stage_bytes = block_cls * row_elems * out_item
    elif needs_cast:
        kernel = _csc_cast_kernel(n_cls, block_cls, num_blocks, n_ctx, ctx_dim,
                                  out_dtype)
        scratch = [pltpu.VMEM((2, block_cls, n_ctx, ctx_dim), out_dtype),
                   pltpu.SemaphoreType.DMA((2,))]
        semantics = ("arbitrary",)
        stage_bytes = 2 * block_cls * row_elems * out_item
    else:
        kernel = _csc_direct_kernel(n_cls, block_cls, n_ctx)
        scratch = [pltpu.SemaphoreType.DMA(())]
        # No cross-step state: safe to shard classes across megacore parts.
        semantics = ("parallel",)
        stage_bytes = 0

    inbound_bytes = 2 * (block_cls if csc else 1) * row_elems * ctx_item
    vmem_limit = max(16 << 20, inbound_bytes + stage_bytes + (8 << 20))

    return pl.pallas_call(
        kernel,
        out_shape=jax.ShapeDtypeStruct((n_cls, seq_len, ctx_dim), out_dtype),
        grid_spec=pltpu.PrefetchScalarGridSpec(
            num_scalar_prefetch=0,
            grid=grid,
            in_specs=[
                ctx_spec,
                pl.BlockSpec(memory_space=pl.ANY),  # embedding stays in HBM
            ],
            out_specs=pl.BlockSpec(memory_space=pl.ANY),
            scratch_shapes=scratch,
        ),
        # Output 0 reuses the HBM buffer of input 1 (the embedding): only the
        # ctx rows are written; prefix/suffix never move.  Zero-copy only when
        # the caller donates the embedding buffer under jit; otherwise XLA
        # inserts one protective full-tensor copy.
        input_output_aliases={1: 0},
        compiler_params=pltpu.CompilerParams(
            dimension_semantics=semantics,
            vmem_limit_bytes=int(vmem_limit),
        ),
    )(ctx3, prompt_embedding)


def reference_forward(ctx, prompt_embedding):
    """Pure-JAX reference: cat([prefix, ctx_expanded, suffix], axis=1)."""
    n_cls, _, d = prompt_embedding.shape
    if ctx.ndim == 2:
        n_ctx = ctx.shape[0]
        ctx = jnp.broadcast_to(ctx[None], (n_cls, n_ctx, d))
    else:
        n_ctx = ctx.shape[1]
    prefix = prompt_embedding[:, :1, :]
    suffix = prompt_embedding[:, 1 + n_ctx:, :]
    return jnp.concatenate(
        [prefix, ctx.astype(prompt_embedding.dtype), suffix], axis=1)


if __name__ == "__main__":
    # Small deterministic setup consistent with the module's __init__:
    # n_ctx = 16 (CoOp default) learnable context tokens, ctx_dim embedding
    # dim, tokenized sequence length seq_len (CLIP uses 77; 32 here).
    n_ctx, ctx_dim, seq_len = 16, 128, 32
    key = jax.random.PRNGKey(0)

    def make_case(key, n_cls, csc, emb_dtype, ctx_dtype):
        k1, k2 = jax.random.split(key)
        emb = jax.random.normal(k1, (n_cls, seq_len, ctx_dim)).astype(emb_dtype)
        shape = (n_cls, n_ctx, ctx_dim) if csc else (n_ctx, ctx_dim)
        ctxv = (0.02 * jax.random.normal(k2, shape)).astype(ctx_dtype)
        return ctxv, emb

    keys = jax.random.split(key, 4)
    cases = [
        # name,             n_cls, csc,   emb dtype,     ctx dtype
        ("generic",            8, False, jnp.float32,  jnp.float32),
        ("generic_cast_odd",   7, False, jnp.bfloat16, jnp.float32),
        ("csc_direct_odd",     7, True,  jnp.float32,  jnp.float32),
        ("csc_cast",           6, True,  jnp.bfloat16, jnp.float32),
    ]

    first_generic = None
    for k, (name, n_cls, csc, emb_dt, ctx_dt) in zip(keys, cases):
        ctxv, emb = make_case(k, n_cls, csc, emb_dt, ctx_dt)
        expected = reference_forward(ctxv, emb)
        out = jax.block_until_ready(prompt_learner_forward(ctxv, emb))
        assert out.shape == (n_cls, seq_len, ctx_dim), (name, out.shape)
        assert out.dtype == emb_dt, (name, out.dtype)
        assert jnp.allclose(out.astype(jnp.float32), expected.astype(jnp.float32),
                            atol=1e-3, rtol=1e-2), f"{name}: mismatch"
        if first_generic is None:
            first_generic = (ctxv, emb, expected)

    # Intended zero-copy path: jit + donated embedding buffer honours the
    # input/output alias, so prefix/suffix bytes are never re-copied.
    ctxv, emb, expected = first_generic
    donating = jax.jit(prompt_learner_forward, donate_argnums=1)
    emb_copy = jax.block_until_ready(emb * 1.0)  # fresh buffer we may donate
    with warnings.catch_warnings():
        warnings.simplefilter("ignore")
        out_j = jax.block_until_ready(donating(ctxv, emb_copy))
    assert jnp.allclose(out_j.astype(jnp.float32), expected.astype(jnp.float32),
                        atol=1e-3, rtol=1e-2), "jit+donate mismatch"

    print("KERNEL_OK")
</pallas_src>

<mosaic_0001>
module attributes {stable_mosaic.version = 11 : i64} {
  func.func @kernel(%arg0: i32, %arg1: memref<1x16x128xf32, #tpu.memory_space<vmem>>, %arg2: memref<8x32x128xf32, #tpu.memory_space<any>>, %arg3: memref<8x32x128xf32, #tpu.memory_space<any>>, %arg4: memref<4x16x128xf32, #tpu.memory_space<vmem>>, %arg5: memref<2x!tpu.dma_semaphore, #tpu.memory_space<semaphore_mem>>) attributes {dimension_semantics = [#tpu.dimension_semantics<arbitrary>], iteration_bounds = array<i64: 2>, scalar_prefetch = 0 : i64, scratch_operands = 2 : i64, tpu.core_type = #tpu.core_type<tc>, window_params = [{pipeline_mode = #tpu.pipeline_mode<synchronous>, transform_indices = @transform_0, window_bounds = array<i64: 1, 16, 128>}, {}, {}]} {
    %c2_i32 = arith.constant 2 : i32
    %0 = arith.remsi %arg0, %c2_i32 : i32
    %c0_i32 = arith.constant 0 : i32
    %1 = arith.cmpi eq, %arg0, %c0_i32 : i32
    %2 = arith.extui %1 : i1 to i32
    %c0_i32_0 = arith.constant 0 : i32
    %3 = arith.cmpi ne, %2, %c0_i32_0 : i32
    scf.if %3 {
      %c0 = arith.constant 0 : index
      %c0_7 = arith.constant 0 : index
      %c0_8 = arith.constant 0 : index
      %15 = vector.load %arg1[%c0, %c0_7, %c0_8] : memref<1x16x128xf32, #tpu.memory_space<vmem>>, vector<1x16x128xf32>
      %16 = vector.shape_cast %15 : vector<1x16x128xf32> to vector<1x16x128xf32>
      %17 = vector.broadcast %16 : vector<1x16x128xf32> to vector<4x16x128xf32>
      %c0_9 = arith.constant 0 : index
      %c0_10 = arith.constant 0 : index
      %c0_11 = arith.constant 0 : index
      %18 = vector.load %arg4[%c0_9, %c0_10, %c0_11] : memref<4x16x128xf32, #tpu.memory_space<vmem>>, vector<4x16x128xf32>
      tpu.vector_store %arg4[%c0_9, %c0_10, %c0_11], %17 {strides = array<i32>} : memref<4x16x128xf32, #tpu.memory_space<vmem>>, vector<4x16x128xf32>,
    } else {
    }
    %c2_i32_1 = arith.constant 2 : i32
    %4 = arith.cmpi sge, %arg0, %c2_i32_1 : i32
    %5 = arith.extui %4 : i1 to i32
    %c0_i32_2 = arith.constant 0 : i32
    %6 = arith.cmpi ne, %5, %c0_i32_2 : i32
    scf.if %6 {
      %c0_i32_7 = arith.constant 0 : i32
      %c1_i32_8 = arith.constant 1 : i32
      %c0_i32_9 = arith.constant 0 : i32
      %15 = tpu.memref_slice %arg3[%c0_i32_7, %c1_i32_8, %c0_i32_9] : memref<8x32x128xf32, #tpu.memory_space<any>> -> memref<4x16x128xf32, #tpu.memory_space<any>>
      %16 = tpu.memref_slice %arg5[%0] : memref<2x!tpu.dma_semaphore, #tpu.memory_space<semaphore_mem>> -> memref<1x!tpu.dma_semaphore, #tpu.memory_space<semaphore_mem>>
      %17 = tpu.memref_squeeze %16 : memref<1x!tpu.dma_semaphore, #tpu.memory_space<semaphore_mem>> -> memref<!tpu.dma_semaphore, #tpu.memory_space<semaphore_mem>>
      tpu.wait_dma2 semaphore(%17 : memref<!tpu.dma_semaphore, #tpu.memory_space<semaphore_mem>>) src(%arg4 : memref<4x16x128xf32, #tpu.memory_space<vmem>>) dst(%15 : memref<4x16x128xf32, #tpu.memory_space<any>>)
    } else {
    }
    %c4_i32 = arith.constant 4 : i32
    %7 = arith.muli %arg0, %c4_i32 : i32
    %c4_i32_3 = arith.constant 4 : i32
    %8 = arith.minsi %7, %c4_i32_3 : i32
    %c1_i32 = arith.constant 1 : i32
    %c0_i32_4 = arith.constant 0 : i32
    %9 = tpu.memref_slice %arg3[%8, %c1_i32, %c0_i32_4] : memref<8x32x128xf32, #tpu.memory_space<any>> -> memref<4x16x128xf32, #tpu.memory_space<any>>
    %10 = tpu.memref_slice %arg5[%0] : memref<2x!tpu.dma_semaphore, #tpu.memory_space<semaphore_mem>> -> memref<1x!tpu.dma_semaphore, #tpu.memory_space<semaphore_mem>>
    %11 = tpu.memref_squeeze %10 : memref<1x!tpu.dma_semaphore, #tpu.memory_space<semaphore_mem>> -> memref<!tpu.dma_semaphore, #tpu.memory_space<semaphore_mem>>
    tpu.enqueue_dma source(%arg4 : memref<4x16x128xf32, #tpu.memory_space<vmem>>) target(%9 : memref<4x16x128xf32, #tpu.memory_space<any>>) target_semaphore(%11 : memref<!tpu.dma_semaphore, #tpu.memory_space<semaphore_mem>>)
    %c1_i32_5 = arith.constant 1 : i32
    %12 = arith.cmpi eq, %arg0, %c1_i32_5 : i32
    %13 = arith.extui %12 : i1 to i32
    %c0_i32_6 = arith.constant 0 : i32
    %14 = arith.cmpi ne, %13, %c0_i32_6 : i32
    scf.if %14 {
      %c0_i32_7 = arith.constant 0 : i32
      %c1_i32_8 = arith.constant 1 : i32
      %c0_i32_9 = arith.constant 0 : i32
      %15 = tpu.memref_slice %arg3[%c0_i32_7, %c1_i32_8, %c0_i32_9] : memref<8x32x128xf32, #tpu.memory_space<any>> -> memref<4x16x128xf32, #tpu.memory_space<any>>
      %16 = tpu.memref_slice %arg5[%0] : memref<2x!tpu.dma_semaphore, #tpu.memory_space<semaphore_mem>> -> memref<1x!tpu.dma_semaphore, #tpu.memory_space<semaphore_mem>>
      %17 = tpu.memref_squeeze %16 : memref<1x!tpu.dma_semaphore, #tpu.memory_space<semaphore_mem>> -> memref<!tpu.dma_semaphore, #tpu.memory_space<semaphore_mem>>
      tpu.wait_dma2 semaphore(%17 : memref<!tpu.dma_semaphore, #tpu.memory_space<semaphore_mem>>) src(%arg4 : memref<4x16x128xf32, #tpu.memory_space<vmem>>) dst(%15 : memref<4x16x128xf32, #tpu.memory_space<any>>)
      %c1_i32_10 = arith.constant 1 : i32
      %18 = arith.subi %c1_i32_10, %0 : i32
      %c0_i32_11 = arith.constant 0 : i32
      %c1_i32_12 = arith.constant 1 : i32
      %c0_i32_13 = arith.constant 0 : i32
      %19 = tpu.memref_slice %arg3[%c0_i32_11, %c1_i32_12, %c0_i32_13] : memref<8x32x128xf32, #tpu.memory_space<any>> -> memref<4x16x128xf32, #tpu.memory_space<any>>
      %20 = tpu.memref_slice %arg5[%18] : memref<2x!tpu.dma_semaphore, #tpu.memory_space<semaphore_mem>> -> memref<1x!tpu.dma_semaphore, #tpu.memory_space<semaphore_mem>>
      %21 = tpu.memref_squeeze %20 : memref<1x!tpu.dma_semaphore, #tpu.memory_space<semaphore_mem>> -> memref<!tpu.dma_semaphore, #tpu.memory_space<semaphore_mem>>
      tpu.wait_dma2 semaphore(%21 : memref<!tpu.dma_semaphore, #tpu.memory_space<semaphore_mem>>) src(%arg4 : memref<4x16x128xf32, #tpu.memory_space<vmem>>) dst(%19 : memref<4x16x128xf32, #tpu.memory_space<any>>)
    } else {
    }
    return
  }
  func.func @transform_0(%arg0: i32) -> (i32, i32, i32) {
    %c0_i32 = arith.constant 0 : i32
    %c0_i32_0 = arith.constant 0 : i32
    %c0_i32_1 = arith.constant 0 : i32
    %c0_i32_2 = arith.constant 0 : i32
    return %c0_i32, %c0_i32_0, %c0_i32_1 : i32, i32, i32
  }
}

</mosaic_0001>

<bundles_post_ra>
// kernel: tpu_custom_call.1
= control target key start
LH: loop header
LB: loop body
LE: loop exit
PB: predicated region body
PF: predicated region fallthrough
CT: control target
= control target key end

     0   :  { %s223_s9 = smov 0   ;;  %s255_s0 = inlined_call_operand.vmem [shape: f32[1,16,128], index: 0, kind: input, shape index: {}]   ;;  %s256_s1 = inlined_call_operand.hbm [shape: f32[8,32,128], index: 1, kind: input, shape index: {}, may-alias: {1,2}]   ;;  %s257_s2 = inlined_call_operand.hbm [shape: f32[8,32,128], index: 2, kind: output, shape index: {}, may-alias: {1,2}]  }
   0x1 LB: > { %s229_s10 = sadd.s32 4294967295, %s202_s9   ;;  %p132_p0 = scmp.lt.s32.totalorder %s202_s9, 1  ;;  %s202_s9 = sphi %s223_s9, %s12_s9  }
   0x2   : > { %p48_p1 = scmp.lt.s32.totalorder (!%p132_p0), %s229_s10, 0  ;;  %s49_s1 = ssub.s32 (!%p132_p0), 0, %s229_s10 }
   0x3   : > { %44 = sbr.rel (%p132_p0) target bundleno = 39 (0x27), region = 24  ;;  %s133_s11 = smin.u32 (!%p132_p0), %s229_s10, %s49_s1 }
   0x4   : > { %s51_s12 = sand.u32 (!%p132_p0), 1, %s133_s11   ;;  %p134_p2 = scmp.ne.s32.totalorder (!%p132_p0), %s229_s10, 0 }
   0x5   : > { %s52_s13 = ssub.s32 (!%p132_p0), 0, %s51_s12 }
   0x8   : > { %s259_s13 = smov (!%p48_p1, %s52_s13), %s51_s12  ;;  %57 = sbr.rel (%p134_p2) target bundleno = 22 (0x16), region = 28 }
   0xd   : > { %v58_v0 = vld [vmem:[%s255_s0] sm:$0xff]  ;;  %v59_v1 = vld [vmem:[%s255_s0 + $0x8] sm:$0xff] }
   0xe   : > { %60 = vst [vmem:[#allocation2] sm:$0xff] %v58_v0 }
   0xf   : > { %62 = vst [vmem:[#allocation2 + $0x10] sm:$0xff] %v58_v0 }
  0x10   : > { %64 = vst [vmem:[#allocation2 + $0x20] sm:$0xff] %v58_v0 }
  0x11   : > { %66 = vst [vmem:[#allocation2 + $0x30] sm:$0xff] %v58_v0 }
  0x12   : > { %61 = vst [vmem:[#allocation2 + $0x8] sm:$0xff] %v59_v1 }
  0x13   : > { %63 = vst [vmem:[#allocation2 + $0x18] sm:$0xff] %v59_v1 }
  0x14   : > { %65 = vst [vmem:[#allocation2 + $0x28] sm:$0xff] %v59_v1 }
  0x15   : > { %67 = vst [vmem:[#allocation2 + $0x38] sm:$0xff] %v59_v1 }
  0x16 PF: > { %p146_p3 = scmp.ge.s32.totalorder %s229_s10, 2  ;;  %s72_s18 = scalar_lea.sflag [#allocation3], %s259_s13 }
  0x18   : > { %189 = dma.done.wait (%p146_p3), %s72_s18, 1024 }
  0x19   : > { %191 = vsyncadd (%p146_p3), %s72_s18, 4294966272  ;;  %s136_s19 = sshll.u32 %s229_s10, 2  ;;  %s204_s20 = smov [#allocation2]  }
  0x1a   : > { %p78_p4 = scmp.lt.s32.totalorder %s136_s19, 4  ;;  %s84_s21 = sshll.u32 %s204_s20, 4  ;;  %s85_s21 = int_to_ptr.vmem [resolvable:$true] %s84_s21 }
  0x1b   : > { %p147_p5 = scmp.eq.s32.totalorder %s229_s10, 1  ;;  %s205_s28 = smov 256  }
  0x1c   : > { %s261_s19 = smov (!%p78_p4, %s136_s19), 4  ;;  %s206_s29 = smov 512  }
  0x1d   : > { %s137_s22 = sshll.u32 %s261_s19, 5  ;;  %s207_s30 = smov 16  }
  0x1e   : > { %s119_s25 = scalar_lea.hbm %s257_s2, %s137_s22 }
  0x1f   : > { %s120_s26 = scalar_lea.hbm %s119_s25, 1 }
  0x20   : > { %s86_s27 = sshll.u32 %s120_s26, 4  ;;  %s87_s27 = int_to_ptr.hbm [resolvable:$true] %s86_s27 }
  0x21   : > { %91 = dma.vmem_to_hbm [thread:$0]  %s85_s21, 1024, %s87_s27, %s72_s18, %s205_s28, %s206_s29, %s207_s30 }
  0x22   : > { %193 = dma.done.wait (%p147_p5), %s72_s18, 1024 }
  0x23   : > { %195 = vsyncadd (%p147_p5), %s72_s18, 4294966272  ;;  %s100_s3 = ssub.s32 1, %s259_s13 }
  0x24   : > { %s101_s4 = scalar_lea.sflag [#allocation3], %s100_s3 }
  0x25   : > { %197 = dma.done.wait (%p147_p5), %s101_s4, 1024 }
  0x26   : > { %199 = vsyncadd (%p147_p5), %s101_s4, 4294966272 }
  0x27 PF: > { %s12_s9 = sadd.s32 1, %s202_s9  }
  0x28   : > { %p9_p6 = scmp.ge.s32.totalorder %s12_s9, 3  }
  0x2a   :  { %11 = sbr.rel (!%p9_p6) target bundleno = 1 (0x1), region = 52 }
  0x2f   :  { %104 = vsyncmov [#allocation3] }
  0x32   :  { %s105_s5 = vpop.sfrf %104 }
  0x33   :  { %p139_p7 = scmp.ne.s32.totalorder %s105_s5, 0 }
  0x35   :  { %109 = shalt.err (%p139_p7)  }
  0x36   :  { %111 = vsyncmov [#allocation3 + $0x1] }
  0x39   :  { %s112_s6 = vpop.sfrf %111 }
  0x3a   :  { %p140_p8 = scmp.ne.s32.totalorder %s112_s6, 0 }
  0x3c   :  { %116 = shalt.err (%p140_p8)  }

</bundles_post_ra>
